<compile_context>
chip_gen: v6e
topology: v6e:2x2x1
jax: 0.10.0
libtpu: 0.0.40
codegen_flags: <defaults>
</compile_context>

<pallas_src>
import jax
import jax.numpy as jnp
import numpy as np
from jax.experimental import pallas as pl
from jax.experimental.pallas import tpu as pltpu

_LANE = 128
_BLOCK_BUDGET_BYTES = 4 << 20   # one x block; ~4x this per step with double buffering
_VMEM_LIMIT_BYTES = 32 << 20    # above v5e's 16 MiB default, safe under v7x's 64 MiB physical


def _bias_add_kernel(x_ref, b_ref, o_ref):
    # x_ref: (TM, TC); b_ref: (TM, 1) [per-row bias] or (1, TC) [per-column bias].
    # Pure VPU broadcast add; lrmul already folded into b on the host.
    o_ref[...] = (x_ref[...] + b_ref[...]).astype(o_ref.dtype)


def _sublane_pack(dtype):
    itemsize = jnp.dtype(dtype).itemsize
    return {4: 8, 2: 16, 1: 32}.get(itemsize, 8)


def _choose_tiles(rows, cols, dtype):
    """Pick (tm, tc): lane-dense tc (multiple of 128 or full extent), sublane-
    pack-aligned tm, with the x block capped at _BLOCK_BUDGET_BYTES."""
    itemsize = jnp.dtype(dtype).itemsize
    pack = _sublane_pack(dtype)

    # Column tile: large multiple of 128 lanes for unmasked stores; fall back
    # to the full extent when cols itself is not a multiple of 128 (small
    # arrays) since a full-extent block bypasses the (8,128) constraint.
    if cols % _LANE == 0 and cols > _LANE:
        max_tc = max(_LANE, (_BLOCK_BUDGET_BYTES // (pack * itemsize)) // _LANE * _LANE)
        tc = min(cols, max_tc, 8192)
    else:
        tc = cols

    # Row tile: as many pack-aligned rows as fit in the block budget.
    row_bytes = max(1, tc * itemsize)
    max_tm = max(pack, (_BLOCK_BUDGET_BYTES // row_bytes) // pack * pack)
    tm = rows if rows <= max_tm else max_tm

    # Whole array fits in one block but is big: split rows into ~4 blocks so
    # v7x megacore sharding has >=2 even steps and the pipeline overlaps
    # input DMA with output writeback.  Tiny arrays stay single-block (the
    # per-step overhead would dominate).
    if tm == rows and tc == cols:
        total_bytes = rows * cols * itemsize
        if total_bytes >= _BLOCK_BUDGET_BYTES and rows >= 4 * pack:
            tm = max(pack, (rows // 4) // pack * pack)

    return tm, tc


def apply_bias_forward(x, bias, lrmul=1.0):
    """Pallas equivalent of apply_bias.forward(x, lrmul)."""
    # Fold lrmul into the (tiny) bias vector on the host — rides along for free.
    b = bias.astype(x.dtype) * jnp.asarray(lrmul, dtype=x.dtype)

    if x.ndim == 2:
        rows, cols = x.shape
        x2 = x
        b2 = b.reshape(1, cols)                       # broadcast along rows
        bias_per_row = False
    else:
        assert x.ndim == 4, f"expected 2D or 4D input, got {x.shape}"
        N, C, H, W = x.shape
        assert bias.shape == (C,)
        hw = H * W
        if hw % _LANE == 0:
            # Lane-dense spatial: (N*C, H*W) with a per-row (= per-plane) bias.
            rows, cols = N * C, hw
            x2 = x.reshape(rows, cols)
            b2 = jnp.tile(b, N).reshape(rows, 1)
            bias_per_row = True
        else:
            # Small spatial (4x4 / 8x8 ...): fold C into the lane dim so the
            # output last dim is as wide as possible; bias becomes a tiny
            # (1, C*H*W) row that stays VMEM-resident (constant index map).
            rows, cols = N, C * hw
            x2 = x.reshape(rows, cols)
            b2 = jnp.repeat(b, hw).reshape(1, cols)
            bias_per_row = False

    tm, tc = _choose_tiles(rows, cols, x.dtype)
    grid = (pl.cdiv(rows, tm), pl.cdiv(cols, tc))

    if bias_per_row:
        b_spec = pl.BlockSpec((tm, 1), lambda i, j: (i, 0))
    else:
        b_spec = pl.BlockSpec((1, tc), lambda i, j: (0, j))

    itemsize = jnp.dtype(x.dtype).itemsize
    cost = pl.CostEstimate(
        flops=rows * cols,
        transcendentals=0,
        bytes_accessed=2 * rows * cols * itemsize + int(b2.size) * itemsize,
    )

    out = pl.pallas_call(
        _bias_add_kernel,
        out_shape=jax.ShapeDtypeStruct((rows, cols), x.dtype),
        grid=grid,
        in_specs=[
            pl.BlockSpec((tm, tc), lambda i, j: (i, j)),
            b_spec,
        ],
        out_specs=pl.BlockSpec((tm, tc), lambda i, j: (i, j)),
        compiler_params=pltpu.CompilerParams(
            dimension_semantics=("parallel", "parallel"),
            vmem_limit_bytes=_VMEM_LIMIT_BYTES,
        ),
        cost_estimate=cost,
    )(x2, b2)
    return out.reshape(x.shape)


if __name__ == "__main__":
    key = jax.random.PRNGKey(0)
    k1, k2, k3, k4, k5, k6 = jax.random.split(key, 6)

    # 4D NCHW, lane-dense spatial: batch=2, channels=4, spatial=16x16
    # (kernel sees (8, 256) with a per-row bias).
    x4 = jax.random.normal(k1, (2, 4, 16, 16), dtype=jnp.float32)
    b4 = jax.random.normal(k2, (4,), dtype=jnp.float32)
    y4 = jax.block_until_ready(apply_bias_forward(x4, b4, lrmul=1.0))
    ref4 = x4 + b4.reshape(1, -1, 1, 1)
    assert y4.shape == x4.shape, y4.shape
    assert np.allclose(np.asarray(y4), np.asarray(ref4), atol=1e-6, rtol=1e-6)

    # 4D NCHW, small spatial (flatten-to-(N, C*H*W) path): 2x3x4x4, lrmul=2.0.
    x4s = jax.random.normal(k3, (2, 3, 4, 4), dtype=jnp.float32)
    b4s = jax.random.normal(k4, (3,), dtype=jnp.float32)
    y4s = jax.block_until_ready(apply_bias_forward(x4s, b4s, lrmul=2.0))
    ref4s = x4s + (b4s * 2.0).reshape(1, -1, 1, 1)
    assert y4s.shape == x4s.shape, y4s.shape
    assert np.allclose(np.asarray(y4s), np.asarray(ref4s), atol=1e-6, rtol=1e-6)

    # 2D path: batch=2, hidden=32, lrmul=0.5.
    x2 = jax.random.normal(k5, (2, 32), dtype=jnp.float32)
    b2 = jax.random.normal(k6, (32,), dtype=jnp.float32)
    y2 = jax.block_until_ready(apply_bias_forward(x2, b2, lrmul=0.5))
    ref2 = x2 + b2 * 0.5
    assert y2.shape == x2.shape, y2.shape
    assert np.allclose(np.asarray(y2), np.asarray(ref2), atol=1e-6, rtol=1e-6)

    print("KERNEL_OK")
</pallas_src>

<mosaic_0001>
module attributes {stable_mosaic.version = 11 : i64} {
  func.func @_bias_add_kernel(%arg0: i32, %arg1: i32, %arg2: memref<8x256xf32, #tpu.memory_space<vmem>>, %arg3: memref<8x1xf32, #tpu.memory_space<vmem>>, %arg4: memref<8x256xf32, #tpu.memory_space<vmem>>) attributes {dimension_semantics = [#tpu.dimension_semantics<parallel>, #tpu.dimension_semantics<parallel>], iteration_bounds = array<i64: 1, 1>, scalar_prefetch = 0 : i64, scratch_operands = 0 : i64, tpu.core_type = #tpu.core_type<tc>, window_params = [{transform_indices = @transform_0, window_bounds = array<i64: 8, 256>}, {transform_indices = @transform_1, window_bounds = array<i64: 8, 1>}, {transform_indices = @transform_2, window_bounds = array<i64: 8, 256>}]} {
    %c0 = arith.constant 0 : index
    %c0_0 = arith.constant 0 : index
    %0 = vector.load %arg2[%c0, %c0_0] : memref<8x256xf32, #tpu.memory_space<vmem>>, vector<8x256xf32>
    %c0_1 = arith.constant 0 : index
    %c0_2 = arith.constant 0 : index
    %1 = vector.load %arg3[%c0_1, %c0_2] : memref<8x1xf32, #tpu.memory_space<vmem>>, vector<8x1xf32>
    %2 = vector.broadcast %1 : vector<8x1xf32> to vector<8x256xf32>
    %3 = arith.addf %0, %2 : vector<8x256xf32>
    %c0_3 = arith.constant 0 : index
    %c0_4 = arith.constant 0 : index
    %4 = vector.load %arg4[%c0_3, %c0_4] : memref<8x256xf32, #tpu.memory_space<vmem>>, vector<8x256xf32>
    tpu.vector_store %arg4[%c0_3, %c0_4], %3 {strides = array<i32>} : memref<8x256xf32, #tpu.memory_space<vmem>>, vector<8x256xf32>,
    return
  }
  func.func @transform_0(%arg0: i32, %arg1: i32) -> (i32, i32) {
    %c0_i32 = arith.constant 0 : i32
    return %arg0, %arg1 : i32, i32
  }
  func.func @transform_1(%arg0: i32, %arg1: i32) -> (i32, i32) {
    %c0_i32 = arith.constant 0 : i32
    %c0_i32_0 = arith.constant 0 : i32
    return %arg0, %c0_i32 : i32, i32
  }
  func.func @transform_2(%arg0: i32, %arg1: i32) -> (i32, i32) {
    %c0_i32 = arith.constant 0 : i32
    return %arg0, %arg1 : i32, i32
  }
}

</mosaic_0001>

<bundles_post_ra>
// kernel: tpu_custom_call.1
= control target key start
LH: loop header
LB: loop body
LE: loop exit
PB: predicated region body
PF: predicated region fallthrough
CT: control target
= control target key end

     0   :  { %7 = vsyncpa [#allocation3], 0  ;;  %s126_s0 = inlined_call_operand.hbm [shape: f32[8,256], index: 0, kind: input, shape index: {}]   ;;  %s127_s1 = inlined_call_operand.vmem [shape: f32[8,1], index: 1, kind: input, shape index: {}]   ;;  %s128_s2 = inlined_call_operand.hbm [shape: f32[8,256], index: 2, kind: output, shape index: {}]  }
   0x1   :  { %8 = vsyncpa [#allocation4], 0  ;;  %s99_s9 = smov [#allocation2]  }
   0x2   :  { %s15_s10 = sshll.u32 %s99_s9, 4  ;;  %s16_s10 = int_to_ptr.vmem [resolvable:$true] %s15_s10 }
   0x3   :  { %s63_s11 = scalar_lea.vmem %s16_s10, 256  ;;  %p68_p1 = scmp.lt.s32.totalorder %s16_s10, %s16_s10 }
   0x4   :  { %p64_p0 = scmp.ne.s32.totalorder %s16_s10, %s63_s11  ;;  %p69_p2 = scmp.lt.s32.totalorder %s63_s11, %s63_s11 }
   0x6   :  { %p70_p3 = por %p69_p2, %p68_p1 }
   0x8   :  { %p71_p4 = pnand %p70_p3, %p64_p0 }
   0xa   :  { %74 = shalt.err (!%p71_p4)
}
   0xb   :  { %18 = dma.hbm_to_vmem [thread:$0]  %s126_s0, 256, %s16_s10, [#allocation3]  }
   0xc   :  { %95 = dma.done.wait [#allocation3], 256  }
   0xd   :  { %96 = vsyncadd [#allocation3], 4294967040  ;;  %v100_v0 = vmov 0   ;;  %v26_v1 = vld [vmem:[%s127_s1] sm:$0xff]  ;;  %v25_v3 = vld [vmem:[#allocation2 + $0x8] sm:$0xff]  ;;  %s101_s16 = smov [#allocation5]  }
   0xe   :  { %54 = vset.pattern.permute.xlu0 %v100_v0  ;;  %v24_v2 = vld [vmem:[#allocation2] sm:$0xff]  ;;  %s42_s17 = sshll.u32 %s101_s16, 4  ;;  %s43_s17 = int_to_ptr.vmem [resolvable:$true] %s42_s17 }
   0xf   :  { %29 = vperm.xlu0 %54, %v26_v1   ;;  %s75_s0 = scalar_lea.vmem %s43_s17, 256  ;;  %p80_p6 = scmp.lt.s32.totalorder %s43_s17, %s43_s17 }
  0x10   :  { %p76_p5 = scmp.ne.s32.totalorder %s43_s17, %s75_s0  ;;  %p81_p7 = scmp.lt.s32.totalorder %s75_s0, %s75_s0 }
  0x12   :  { %p82_p8 = por %p81_p7, %p80_p6 }
  0x14   :  { %p83_p9 = pnand %p82_p8, %p76_p5 }
  0x8a   :  { %v30_v4 = vpop.permute.xlu0 %29 }
  0x8b   :  { %v32_v5 = vadd.f32 %v30_v4, %v24_v2  ;;  %v33_v6 = vadd.f32 %v30_v4, %v25_v3 }
  0x8d   :  { %34 = vst [vmem:[#allocation5] sm:$0xff] %v32_v5  ;;  %35 = vst [vmem:[#allocation5 + $0x8] sm:$0xff] %v33_v6 }
  0x8e   :  { %86 = shalt.err (!%p83_p9)
}
  0x8f   :  { %45 = dma.vmem_to_hbm [thread:$0]  %s43_s17, 256, %s128_s2, [#allocation4]  }
  0x90   :  { %97 = dma.done.wait [#allocation4], 256  }
  0x91   :  { %98 = vsyncadd [#allocation4], 4294967040 }
  0x92   :  { %49 = vsyncpa [#allocation3], 1 }
  0x93   :  { %50 = vsyncpa [#allocation4], 1 }

</bundles_post_ra>
